<compile_context>
chip_gen: v6e
topology: v6e:2x2x1
jax: 0.10.0
libtpu: 0.0.40
codegen_flags: <defaults>
</compile_context>

<pallas_src>
import functools

import jax
import jax.numpy as jnp
from jax import lax
from jax.experimental import pallas as pl
from jax.experimental.pallas import tpu as pltpu

_MIB = 1024 * 1024


def _round_up(x: int, m: int) -> int:
    return -(-x // m) * m


def _vmem_capacity_bytes() -> int:
    try:
        return int(pltpu.get_tpu_info().vmem_capacity_bytes)
    except Exception:  # interpret mode / older jax: assume the smallest (v7x)
        return 64 * _MIB


def _pick_row_tile(batch: int, target: int, align: int) -> int:
    """Aligned row tile ~<= target that balances tiles across one half."""
    tiles_per_half = max(1, -(-batch // target))
    tq = -(-batch // tiles_per_half)
    return _round_up(tq, align)


def _estimate_vmem_bytes(b_pad: int, d: int, tq: int, in_bytes: int) -> int:
    resident = 2 * b_pad * d * in_bytes + 4 * b_pad * 4      # reps + norm vectors
    row_tmps = 4 * tq * d * 4                                # a1/a2/anchor/lhs
    slab_tmps = 2 * tq * b_pad * 4 * 3                       # sim/exp/mask slabs
    return resident + row_tmps + slab_tmps


def _simclr_kernel(r1_ref, r2_ref, invc1_ref, invc2_ref, inva_ref, invp_ref,
                   out_ref, *, batch, b_pad, row_tile, tiles_per_half,
                   inv_temp, use_bf16, sublane_align):
    i = pl.program_id(0)
    s = i * row_tile                           # global row offset in [r1_pad; r2_pad]
    in_half2 = i >= tiles_per_half
    local_s = jnp.where(in_half2, s - b_pad, s)
    local_s = pl.multiple_of(local_s, sublane_align)

    # Anchor rows of this tile and their positive partners (the other view).
    a1 = r1_ref[pl.ds(local_s, row_tile), :].astype(jnp.float32)
    a2 = r2_ref[pl.ds(local_s, row_tile), :].astype(jnp.float32)
    inv_a = inva_ref[...]                      # (TQ, 1) anchor-row inverse norms
    inv_p = invp_ref[...]                      # (TQ, 1) partner-row inverse norms

    # Positive logit <r1_n, r2_n>/T — symmetric in the two views, so no partner
    # select is needed (only the matmul LHS needs the anchor selected).
    pos = jnp.sum(a1 * a2, axis=-1, keepdims=True) * (inv_a * inv_p) * inv_temp

    # MXU LHS: anchor rows scaled by the precomputed inverse norm and by 1/T.
    anchor = jnp.where(in_half2, a2, a1)
    lhs = anchor * (inv_a * inv_temp)
    if use_bf16:
        lhs = lhs.astype(jnp.bfloat16)

    # Two (TQ, B_pad) similarity slabs against the resident views — no concat,
    # no per-step RHS normalization (columns are scaled after the matmul with
    # the hoisted inverse-norm vectors).
    dims = (((1,), (1,)), ((), ()))
    sim1 = lax.dot_general(lhs, r1_ref[...], dims,
                           preferred_element_type=jnp.float32)
    sim2 = lax.dot_general(lhs, r2_ref[...], dims,
                           preferred_element_type=jnp.float32)
    sim1 = sim1 * invc1_ref[...]
    sim2 = sim2 * invc2_ref[...]

    # Mask the self-similarity diagonal (and padded columns) to finfo.min —
    # exactly the reference's fill_diagonal_, robust under bf16 rounding and
    # very low temperatures.
    neg = jnp.finfo(jnp.float32).min
    col = lax.broadcasted_iota(jnp.int32, (row_tile, b_pad), 1)
    row_gid = s + lax.broadcasted_iota(jnp.int32, (row_tile, 1), 0)
    mask1 = col == row_gid                     # diagonal lives in slab1 for half 1
    mask2 = col == row_gid - b_pad             # ... and in slab2 for half 2
    if b_pad != batch:                         # static: ragged batch → pad columns
        col_pad = col >= batch
        mask1 = mask1 | col_pad
        mask2 = mask2 | col_pad
    sim1 = jnp.where(mask1, neg, sim1)
    sim2 = jnp.where(mask2, neg, sim2)

    # Row-wise log-sum-exp merged across the two slabs.
    row_max = jnp.maximum(jnp.max(sim1, axis=-1, keepdims=True),
                          jnp.max(sim2, axis=-1, keepdims=True))
    sum_exp = (jnp.sum(jnp.exp(sim1 - row_max), axis=-1, keepdims=True)
               + jnp.sum(jnp.exp(sim2 - row_max), axis=-1, keepdims=True))
    per_row = row_max + jnp.log(sum_exp) - pos                    # (TQ, 1)

    if b_pad != batch:                         # drop padded anchor rows
        local_row = local_s + lax.broadcasted_iota(jnp.int32, (row_tile, 1), 0)
        per_row = jnp.where(local_row < batch, per_row, 0.0)

    tile_loss = jnp.sum(per_row)
    # Lane-dense (8,128)-aligned per-tile partial block -> unmasked vst; the
    # wrapper only reads element [0, 0] of each block.
    out_ref[...] = jnp.full((8, 128), tile_loss, dtype=jnp.float32)


def simclr_loss(representations_1, representations_2, temperature: float = 0.1,
                *, row_tile=None, use_bf16_matmul: bool = True):
    B, D = representations_1.shape
    assert representations_2.shape == (B, D)
    n = 2 * B

    vmem_cap = _vmem_capacity_bytes()
    vmem_limit = (vmem_cap * 3) // 4           # ~48 MiB on v7x, ~96 MiB on v5e/v6e
    in_dtype = jnp.bfloat16 if use_bf16_matmul else jnp.float32
    in_bytes = 2 if use_bf16_matmul else 4
    align = 16 if use_bf16_matmul else 8

    if row_tile is None:
        target = 512 if vmem_cap >= 100 * _MIB else 256     # v5e/v6e vs v7x
        tq = _pick_row_tile(B, target, align)
        while (tq > align and
               _estimate_vmem_bytes(_round_up(B, tq), D, tq, in_bytes)
               > (vmem_limit * 7) // 10):
            tq = max(align, _round_up(tq // 2, align))
    else:
        tq = _round_up(int(row_tile), align)

    b_pad = _round_up(B, tq)
    tiles_per_half = b_pad // tq
    num_tiles = 2 * tiles_per_half
    pad = b_pad - B

    r1f = representations_1.astype(jnp.float32)
    r2f = representations_2.astype(jnp.float32)
    # F.normalize(dim=1): x / max(||x||, 1e-12).  Inverse norms are computed
    # ONCE here (hoisted out of the grid loop) and applied in-kernel as a row
    # scale on the matmul LHS and a column scale on the similarity slabs.
    inv1 = 1.0 / jnp.maximum(jnp.linalg.norm(r1f, axis=1), 1e-12)
    inv2 = 1.0 / jnp.maximum(jnp.linalg.norm(r2f, axis=1), 1e-12)
    if pad:
        r1f = jnp.pad(r1f, ((0, pad), (0, 0)))
        r2f = jnp.pad(r2f, ((0, pad), (0, 0)))
        inv1 = jnp.pad(inv1, (0, pad))
        inv2 = jnp.pad(inv2, (0, pad))
    r1_p = r1f.astype(in_dtype)                # resident reps (bf16 on fast path)
    r2_p = r2f.astype(in_dtype)
    inv_cols_1 = inv1.reshape(1, b_pad)
    inv_cols_2 = inv2.reshape(1, b_pad)
    inv_rows = jnp.concatenate([inv1, inv2]).reshape(2 * b_pad, 1)

    kernel = functools.partial(
        _simclr_kernel,
        batch=B, b_pad=b_pad, row_tile=tq, tiles_per_half=tiles_per_half,
        inv_temp=float(1.0 / temperature), use_bf16=use_bf16_matmul,
        sublane_align=align,
    )

    def partner_map(i):  # row-norm block of the positive partners (other half)
        return (jnp.where(i < tiles_per_half,
                          i + tiles_per_half, i - tiles_per_half), 0)

    def run(single_buffer_resident: bool):
        # Constant-index resident inputs are DMA'd once; single-buffer them so
        # they are not needlessly double-buffered (matters on v7x's 64 MiB).
        resident_kw = (dict(pipeline_mode=pl.Buffered(1))
                       if single_buffer_resident else {})
        in_specs = [
            pl.BlockSpec((b_pad, D), lambda i: (0, 0), **resident_kw),
            pl.BlockSpec((b_pad, D), lambda i: (0, 0), **resident_kw),
            pl.BlockSpec((1, b_pad), lambda i: (0, 0), **resident_kw),
            pl.BlockSpec((1, b_pad), lambda i: (0, 0), **resident_kw),
            # Tiny per-tile (TQ, 1) row inverse-norm blocks.
            pl.BlockSpec((tq, 1), lambda i: (i, 0)),
            pl.BlockSpec((tq, 1), partner_map),
        ]
        return pl.pallas_call(
            kernel,
            grid=(num_tiles,),
            in_specs=in_specs,
            out_specs=pl.BlockSpec((8, 128), lambda i: (i, 0)),
            out_shape=jax.ShapeDtypeStruct((num_tiles * 8, 128), jnp.float32),
            compiler_params=pltpu.CompilerParams(
                dimension_semantics=("parallel",),   # shards tiles across TCs
                vmem_limit_bytes=int(vmem_limit),
            ),
        )(r1_p, r2_p, inv_cols_1, inv_cols_2, inv_rows, inv_rows)

    try:
        partials = run(True)
    except Exception:  # pl.Buffered(1) unsupported on this jax version -> default
        partials = run(False)

    return jnp.sum(partials.reshape(num_tiles, 8, 128)[:, 0, 0]) / n


def _reference_loss(r1, r2, temperature: float = 0.1):
    """Pure-JAX reference matching the PyTorch module exactly (interleaved)."""
    B, D = r1.shape
    n = 2 * B
    reps = jnp.stack([r1, r2], axis=1).reshape(n, D)
    reps = reps / jnp.maximum(jnp.linalg.norm(reps, axis=1, keepdims=True), 1e-12)
    sim = (reps @ reps.T) / temperature
    sim = jnp.where(jnp.eye(n, dtype=bool), jnp.finfo(jnp.float32).min, sim)
    base = jnp.arange(B)
    targets = jnp.stack([base * 2 + 1, base * 2], axis=1).reshape(-1)
    lse = jax.scipy.special.logsumexp(sim, axis=1)
    return jnp.mean(lse - sim[jnp.arange(n), targets])


if __name__ == "__main__":
    key = jax.random.PRNGKey(0)
    keys = jax.random.split(key, 6)

    cases = [
        (4, 32),     # tiny & ragged vs the 8/16-aligned row tile (padded rows)
        (16, 128),   # lane-aligned feature dim, no row padding in f32 mode
        (20, 96),    # ragged batch, multiple-of-8 rounding exercised
    ]
    for idx, (B, D) in enumerate(cases):
        r1 = jax.random.normal(keys[2 * idx], (B, D), dtype=jnp.float32)
        r2 = jax.random.normal(keys[2 * idx + 1], (B, D), dtype=jnp.float32)

        ref = jax.block_until_ready(_reference_loss(r1, r2, temperature=0.1))

        # Exact-f32 path: should match the reference tightly.
        loss_f32 = jax.block_until_ready(
            simclr_loss(r1, r2, temperature=0.1, use_bf16_matmul=False))
        assert jnp.isfinite(loss_f32), float(loss_f32)
        assert abs(float(loss_f32) - float(ref)) < 1e-4, (
            B, D, float(loss_f32), float(ref))

        # Default bf16-MXU fast path: f32 accumulate/LSE, loose tolerance from
        # bf16 operand rounding of logits of magnitude ~1/T.
        loss_bf16 = jax.block_until_ready(simclr_loss(r1, r2, temperature=0.1))
        assert jnp.isfinite(loss_bf16), float(loss_bf16)
        assert abs(float(loss_bf16) - float(ref)) < 0.25, (
            B, D, float(loss_bf16), float(ref))

    print("KERNEL_OK")
</pallas_src>

<mosaic_0001>
module attributes {stable_mosaic.version = 11 : i64} {
  func.func @_simclr_kernel(%arg0: i32, %arg1: memref<8x32xf32, #tpu.memory_space<vmem>>, %arg2: memref<8x32xf32, #tpu.memory_space<vmem>>, %arg3: memref<1x8xf32, #tpu.memory_space<vmem>>, %arg4: memref<1x8xf32, #tpu.memory_space<vmem>>, %arg5: memref<8x1xf32, #tpu.memory_space<vmem>>, %arg6: memref<8x1xf32, #tpu.memory_space<vmem>>, %arg7: memref<8x128xf32, #tpu.memory_space<vmem>>) attributes {dimension_semantics = [#tpu.dimension_semantics<parallel>], iteration_bounds = array<i64: 2>, scalar_prefetch = 0 : i64, scratch_operands = 0 : i64, tpu.core_type = #tpu.core_type<tc>, window_params = [{pipeline_mode = #tpu.pipeline_mode<synchronous>, transform_indices = @transform_0, window_bounds = array<i64: 8, 32>}, {pipeline_mode = #tpu.pipeline_mode<synchronous>, transform_indices = @transform_1, window_bounds = array<i64: 8, 32>}, {pipeline_mode = #tpu.pipeline_mode<synchronous>, transform_indices = @transform_2, window_bounds = array<i64: 1, 8>}, {pipeline_mode = #tpu.pipeline_mode<synchronous>, transform_indices = @transform_3, window_bounds = array<i64: 1, 8>}, {transform_indices = @transform_4, window_bounds = array<i64: 8, 1>}, {transform_indices = @transform_5, window_bounds = array<i64: 8, 1>}, {transform_indices = @transform_6, window_bounds = array<i64: 8, 128>}]} {
    %c8_i32 = arith.constant 8 : i32
    %0 = arith.muli %arg0, %c8_i32 : i32
    %c1_i32 = arith.constant 1 : i32
    %1 = arith.cmpi sge, %arg0, %c1_i32 : i32
    %c8_i32_0 = arith.constant 8 : i32
    %2 = arith.subi %0, %c8_i32_0 : i32
    %3 = arith.select %1, %2, %0 : i32
    %4 = tpu.assume_multiple %3, 8 : i32
    %5 = arith.index_cast %4 : i32 to index
    %c0 = arith.constant 0 : index
    %6 = vector.load %arg1[%5, %c0] : memref<8x32xf32, #tpu.memory_space<vmem>>, vector<8x32xf32>
    %7 = arith.index_cast %4 : i32 to index
    %c0_1 = arith.constant 0 : index
    %8 = vector.load %arg2[%7, %c0_1] : memref<8x32xf32, #tpu.memory_space<vmem>>, vector<8x32xf32>
    %c0_2 = arith.constant 0 : index
    %c0_3 = arith.constant 0 : index
    %9 = vector.load %arg5[%c0_2, %c0_3] : memref<8x1xf32, #tpu.memory_space<vmem>>, vector<8x1xf32>
    %c0_4 = arith.constant 0 : index
    %c0_5 = arith.constant 0 : index
    %10 = vector.load %arg6[%c0_4, %c0_5] : memref<8x1xf32, #tpu.memory_space<vmem>>, vector<8x1xf32>
    %11 = arith.mulf %6, %8 : vector<8x32xf32>
    %cst = arith.constant dense<0.000000e+00> : vector<8xf32>
    %12 = vector.multi_reduction <add>, %11, %cst [1] : vector<8x32xf32> to vector<8xf32>
    %13 = vector.shape_cast %12 : vector<8xf32> to vector<8x1xf32>
    %14 = arith.mulf %9, %10 : vector<8x1xf32>
    %15 = arith.mulf %13, %14 : vector<8x1xf32>
    %cst_6 = arith.constant 1.000000e+01 : f32
    %16 = vector.broadcast %cst_6 : f32 to vector<8x1xf32>
    %17 = arith.mulf %15, %16 : vector<8x1xf32>
    %18 = arith.select %1, %8, %6 : vector<8x32xf32>
    %cst_7 = arith.constant 1.000000e+01 : f32
    %19 = vector.broadcast %cst_7 : f32 to vector<8x1xf32>
    %20 = arith.mulf %9, %19 : vector<8x1xf32>
    %21 = vector.broadcast %20 : vector<8x1xf32> to vector<8x32xf32>
    %22 = arith.mulf %18, %21 : vector<8x32xf32>
    %c0_8 = arith.constant 0 : index
    %c0_9 = arith.constant 0 : index
    %23 = vector.load %arg1[%c0_8, %c0_9] : memref<8x32xf32, #tpu.memory_space<vmem>>, vector<8x32xf32>
    %cst_10 = arith.constant dense<0.000000e+00> : vector<8x8xf32>
    %24 = tpu.matmul %22, %23, %cst_10 {dimension_numbers = #tpu.dot_dimension_numbers<[1], [1], [0], [0], [0, 0, 1, 0], [], []>} : vector<8x32xf32>, vector<8x32xf32>, vector<8x8xf32> -> vector<8x8xf32>
    %c0_11 = arith.constant 0 : index
    %c0_12 = arith.constant 0 : index
    %25 = vector.load %arg2[%c0_11, %c0_12] : memref<8x32xf32, #tpu.memory_space<vmem>>, vector<8x32xf32>
    %cst_13 = arith.constant dense<0.000000e+00> : vector<8x8xf32>
    %26 = tpu.matmul %22, %25, %cst_13 {dimension_numbers = #tpu.dot_dimension_numbers<[1], [1], [0], [0], [0, 0, 1, 0], [], []>} : vector<8x32xf32>, vector<8x32xf32>, vector<8x8xf32> -> vector<8x8xf32>
    %c0_14 = arith.constant 0 : index
    %c0_15 = arith.constant 0 : index
    %27 = vector.load %arg3[%c0_14, %c0_15] : memref<1x8xf32, #tpu.memory_space<vmem>>, vector<1x8xf32>
    %28 = vector.broadcast %27 : vector<1x8xf32> to vector<8x8xf32>
    %29 = arith.mulf %24, %28 : vector<8x8xf32>
    %c0_16 = arith.constant 0 : index
    %c0_17 = arith.constant 0 : index
    %30 = vector.load %arg4[%c0_16, %c0_17] : memref<1x8xf32, #tpu.memory_space<vmem>>, vector<1x8xf32>
    %31 = vector.broadcast %30 : vector<1x8xf32> to vector<8x8xf32>
    %32 = arith.mulf %26, %31 : vector<8x8xf32>
    %33 = tpu.iota {dimensions = array<i32: 1>} : vector<8x8xi32>
    %34 = tpu.iota {dimensions = array<i32: 0>} : vector<8x1xi32>
    %35 = vector.broadcast %0 : i32 to vector<8x1xi32>
    %36 = arith.addi %35, %34 : vector<8x1xi32>
    %37 = vector.broadcast %36 : vector<8x1xi32> to vector<8x8xi32>
    %38 = arith.cmpi eq, %33, %37 : vector<8x8xi32>
    %c8_i32_18 = arith.constant 8 : i32
    %39 = vector.broadcast %c8_i32_18 : i32 to vector<8x1xi32>
    %40 = arith.subi %36, %39 : vector<8x1xi32>
    %41 = vector.broadcast %40 : vector<8x1xi32> to vector<8x8xi32>
    %42 = arith.cmpi eq, %33, %41 : vector<8x8xi32>
    %c4_i32 = arith.constant 4 : i32
    %43 = vector.broadcast %c4_i32 : i32 to vector<8x8xi32>
    %44 = arith.cmpi sge, %33, %43 : vector<8x8xi32>
    %45 = arith.ori %38, %44 : vector<8x8xi1>
    %46 = arith.ori %42, %44 : vector<8x8xi1>
    %cst_19 = arith.constant -3.40282347E+38 : f32
    %47 = vector.broadcast %cst_19 : f32 to vector<8x8xf32>
    %48 = arith.select %45, %47, %29 : vector<8x8xi1>, vector<8x8xf32>
    %cst_20 = arith.constant -3.40282347E+38 : f32
    %49 = vector.broadcast %cst_20 : f32 to vector<8x8xf32>
    %50 = arith.select %46, %49, %32 : vector<8x8xi1>, vector<8x8xf32>
    %cst_21 = arith.constant dense<0xFF800000> : vector<8xf32>
    %51 = vector.multi_reduction <maximumf>, %48, %cst_21 [1] : vector<8x8xf32> to vector<8xf32>
    %52 = vector.shape_cast %51 : vector<8xf32> to vector<8x1xf32>
    %cst_22 = arith.constant dense<0xFF800000> : vector<8xf32>
    %53 = vector.multi_reduction <maximumf>, %50, %cst_22 [1] : vector<8x8xf32> to vector<8xf32>
    %54 = vector.shape_cast %53 : vector<8xf32> to vector<8x1xf32>
    %55 = arith.maximumf %52, %54 : vector<8x1xf32>
    %56 = vector.broadcast %55 : vector<8x1xf32> to vector<8x8xf32>
    %57 = arith.subf %48, %56 : vector<8x8xf32>
    %58 = math.exp %57 : vector<8x8xf32>
    %cst_23 = arith.constant dense<0.000000e+00> : vector<8xf32>
    %59 = vector.multi_reduction <add>, %58, %cst_23 [1] : vector<8x8xf32> to vector<8xf32>
    %60 = vector.shape_cast %59 : vector<8xf32> to vector<8x1xf32>
    %61 = vector.broadcast %55 : vector<8x1xf32> to vector<8x8xf32>
    %62 = arith.subf %50, %61 : vector<8x8xf32>
    %63 = math.exp %62 : vector<8x8xf32>
    %cst_24 = arith.constant dense<0.000000e+00> : vector<8xf32>
    %64 = vector.multi_reduction <add>, %63, %cst_24 [1] : vector<8x8xf32> to vector<8xf32>
    %65 = vector.shape_cast %64 : vector<8xf32> to vector<8x1xf32>
    %66 = arith.addf %60, %65 : vector<8x1xf32>
    %67 = math.log %66 : vector<8x1xf32>
    %68 = arith.addf %55, %67 : vector<8x1xf32>
    %69 = arith.subf %68, %17 : vector<8x1xf32>
    %70 = tpu.iota {dimensions = array<i32: 0>} : vector<8x1xi32>
    %71 = vector.broadcast %4 : i32 to vector<8x1xi32>
    %72 = arith.addi %71, %70 : vector<8x1xi32>
    %c4_i32_25 = arith.constant 4 : i32
    %73 = vector.broadcast %c4_i32_25 : i32 to vector<8x1xi32>
    %74 = arith.cmpi slt, %72, %73 : vector<8x1xi32>
    %cst_26 = arith.constant 0.000000e+00 : f32
    %75 = vector.broadcast %cst_26 : f32 to vector<8x1xf32>
    %76 = arith.select %74, %69, %75 : vector<8x1xi1>, vector<8x1xf32>
    %77 = vector.shape_cast %76 : vector<8x1xf32> to vector<1x8x1xf32>
    %cst_27 = arith.constant dense<0.000000e+00> : vector<1xf32>
    %78 = vector.multi_reduction <add>, %77, %cst_27 [1, 2] : vector<1x8x1xf32> to vector<1xf32>
    %79 = vector.shape_cast %78 : vector<1xf32> to vector<1x1x1xf32>
    %80 = vector.extract %79[0, 0, 0] : f32 from vector<1x1x1xf32>
    %81 = vector.broadcast %80 : f32 to vector<8x128xf32>
    %c0_28 = arith.constant 0 : index
    %c0_29 = arith.constant 0 : index
    %82 = vector.load %arg7[%c0_28, %c0_29] : memref<8x128xf32, #tpu.memory_space<vmem>>, vector<8x128xf32>
    tpu.vector_store %arg7[%c0_28, %c0_29], %81 {strides = array<i32>} : memref<8x128xf32, #tpu.memory_space<vmem>>, vector<8x128xf32>,
    return
  }
  func.func @transform_0(%arg0: i32) -> (i32, i32) {
    %c0_i32 = arith.constant 0 : i32
    %c0_i32_0 = arith.constant 0 : i32
    %c0_i32_1 = arith.constant 0 : i32
    return %c0_i32, %c0_i32_0 : i32, i32
  }
  func.func @transform_1(%arg0: i32) -> (i32, i32) {
    %c0_i32 = arith.constant 0 : i32
    %c0_i32_0 = arith.constant 0 : i32
    %c0_i32_1 = arith.constant 0 : i32
    return %c0_i32, %c0_i32_0 : i32, i32
  }
  func.func @transform_2(%arg0: i32) -> (i32, i32) {
    %c0_i32 = arith.constant 0 : i32
    %c0_i32_0 = arith.constant 0 : i32
    %c0_i32_1 = arith.constant 0 : i32
    return %c0_i32, %c0_i32_0 : i32, i32
  }
  func.func @transform_3(%arg0: i32) -> (i32, i32) {
    %c0_i32 = arith.constant 0 : i32
    %c0_i32_0 = arith.constant 0 : i32
    %c0_i32_1 = arith.constant 0 : i32
    return %c0_i32, %c0_i32_0 : i32, i32
  }
  func.func @transform_4(%arg0: i32) -> (i32, i32) {
    %c0_i32 = arith.constant 0 : i32
    %c0_i32_0 = arith.constant 0 : i32
    return %arg0, %c0_i32 : i32, i32
  }
  func.func @transform_5(%arg0: i32) -> (i32, i32) {
    %c1_i32 = arith.constant 1 : i32
    %0 = arith.cmpi slt, %arg0, %c1_i32 : i32
    %c1_i32_0 = arith.constant 1 : i32
    %1 = arith.addi %arg0, %c1_i32_0 : i32
    %c1_i32_1 = arith.constant 1 : i32
    %2 = arith.subi %arg0, %c1_i32_1 : i32
    %3 = arith.select %0, %1, %2 : i32
    %c0_i32 = arith.constant 0 : i32
    %c0_i32_2 = arith.constant 0 : i32
    return %3, %c0_i32 : i32, i32
  }
  func.func @transform_6(%arg0: i32) -> (i32, i32) {
    %c0_i32 = arith.constant 0 : i32
    %c0_i32_0 = arith.constant 0 : i32
    return %arg0, %c0_i32 : i32, i32
  }
}

module attributes {stable_mosaic.version = 11 : i64} {
  func.func @_simclr_kernel(%arg0: i32, %arg1: memref<8x32xf32, #tpu.memory_space<vmem>>, %arg2: memref<8x32xf32, #tpu.memory_space<vmem>>, %arg3: memref<1x8xf32, #tpu.memory_space<vmem>>, %arg4: memref<1x8xf32, #tpu.memory_space<vmem>>, %arg5: memref<8x1xf32, #tpu.memory_space<vmem>>, %arg6: memref<8x1xf32, #tpu.memory_space<vmem>>, %arg7: memref<8x128xf32, #tpu.memory_space<vmem>>) attributes {dimension_semantics = [#tpu.dimension_semantics<parallel>], iteration_bounds = array<i64: 2>, scalar_prefetch = 0 : i64, scratch_operands = 0 : i64, tpu.core_type = #tpu.core_type<tc>, window_params = [{pipeline_mode = #tpu.pipeline_mode<synchronous>, transform_indices = @transform_0, window_bounds = array<i64: 8, 32>}, {pipeline_mode = #tpu.pipeline_mode<synchronous>, transform_indices = @transform_1, window_bounds = array<i64: 8, 32>}, {pipeline_mode = #tpu.pipeline_mode<synchronous>, transform_indices = @transform_2, window_bounds = array<i64: 1, 8>}, {pipeline_mode = #tpu.pipeline_mode<synchronous>, transform_indices = @transform_3, window_bounds = array<i64: 1, 8>}, {transform_indices = @transform_4, window_bounds = array<i64: 8, 1>}, {transform_indices = @transform_5, window_bounds = array<i64: 8, 1>}, {transform_indices = @transform_6, window_bounds = array<i64: 8, 128>}]} {
    %c8_i32 = arith.constant 8 : i32
    %0 = arith.muli %arg0, %c8_i32 : i32
    %c1_i32 = arith.constant 1 : i32
    %1 = arith.cmpi sge, %arg0, %c1_i32 : i32
    %c8_i32_0 = arith.constant 8 : i32
    %2 = arith.subi %0, %c8_i32_0 : i32
    %3 = arith.select %1, %2, %0 : i32
    %4 = tpu.assume_multiple %3, 8 : i32
    %5 = arith.index_cast %4 : i32 to index
    %c0 = arith.constant 0 : index
    %6 = vector.load %arg1[%5, %c0] : memref<8x32xf32, #tpu.memory_space<vmem>>, vector<8x32xf32>
    %7 = arith.index_cast %4 : i32 to index
    %c0_1 = arith.constant 0 : index
    %8 = vector.load %arg2[%7, %c0_1] : memref<8x32xf32, #tpu.memory_space<vmem>>, vector<8x32xf32>
    %c0_2 = arith.constant 0 : index
    %c0_3 = arith.constant 0 : index
    %9 = vector.load %arg5[%c0_2, %c0_3] : memref<8x1xf32, #tpu.memory_space<vmem>>, vector<8x1xf32>
    %c0_4 = arith.constant 0 : index
    %c0_5 = arith.constant 0 : index
    %10 = vector.load %arg6[%c0_4, %c0_5] : memref<8x1xf32, #tpu.memory_space<vmem>>, vector<8x1xf32>
    %11 = arith.mulf %6, %8 : vector<8x32xf32>
    %cst = arith.constant dense<0.000000e+00> : vector<8xf32>
    %12 = vector.multi_reduction <add>, %11, %cst [1] : vector<8x32xf32> to vector<8xf32>
    %13 = vector.shape_cast %12 : vector<8xf32> to vector<8x1xf32>
    %14 = arith.mulf %9, %10 : vector<8x1xf32>
    %15 = arith.mulf %13, %14 : vector<8x1xf32>
    %cst_6 = arith.constant 1.000000e+01 : f32
    %16 = vector.broadcast %cst_6 : f32 to vector<8x1xf32>
    %17 = arith.mulf %15, %16 : vector<8x1xf32>
    %18 = arith.select %1, %8, %6 : vector<8x32xf32>
    %cst_7 = arith.constant 1.000000e+01 : f32
    %19 = vector.broadcast %cst_7 : f32 to vector<8x1xf32>
    %20 = arith.mulf %9, %19 : vector<8x1xf32>
    %21 = vector.broadcast %20 : vector<8x1xf32> to vector<8x32xf32>
    %22 = arith.mulf %18, %21 : vector<8x32xf32>
    %c0_8 = arith.constant 0 : index
    %c0_9 = arith.constant 0 : index
    %23 = vector.load %arg1[%c0_8, %c0_9] : memref<8x32xf32, #tpu.memory_space<vmem>>, vector<8x32xf32>
    %cst_10 = arith.constant dense<0.000000e+00> : vector<8x8xf32>
    %24 = tpu.matmul %22, %23, %cst_10 {dimension_numbers = #tpu.dot_dimension_numbers<[1], [1], [0], [0], [0, 0, 1, 0], [], []>} : vector<8x32xf32>, vector<8x32xf32>, vector<8x8xf32> -> vector<8x8xf32>
    %c0_11 = arith.constant 0 : index
    %c0_12 = arith.constant 0 : index
    %25 = vector.load %arg2[%c0_11, %c0_12] : memref<8x32xf32, #tpu.memory_space<vmem>>, vector<8x32xf32>
    %cst_13 = arith.constant dense<0.000000e+00> : vector<8x8xf32>
    %26 = tpu.matmul %22, %25, %cst_13 {dimension_numbers = #tpu.dot_dimension_numbers<[1], [1], [0], [0], [0, 0, 1, 0], [], []>} : vector<8x32xf32>, vector<8x32xf32>, vector<8x8xf32> -> vector<8x8xf32>
    %c0_14 = arith.constant 0 : index
    %c0_15 = arith.constant 0 : index
    %27 = vector.load %arg3[%c0_14, %c0_15] : memref<1x8xf32, #tpu.memory_space<vmem>>, vector<1x8xf32>
    %28 = vector.broadcast %27 : vector<1x8xf32> to vector<8x8xf32>
    %29 = arith.mulf %24, %28 : vector<8x8xf32>
    %c0_16 = arith.constant 0 : index
    %c0_17 = arith.constant 0 : index
    %30 = vector.load %arg4[%c0_16, %c0_17] : memref<1x8xf32, #tpu.memory_space<vmem>>, vector<1x8xf32>
    %31 = vector.broadcast %30 : vector<1x8xf32> to vector<8x8xf32>
    %32 = arith.mulf %26, %31 : vector<8x8xf32>
    %33 = tpu.iota {dimensions = array<i32: 1>} : vector<8x8xi32>
    %34 = tpu.iota {dimensions = array<i32: 0>} : vector<8x1xi32>
    %35 = vector.broadcast %0 : i32 to vector<8x1xi32>
    %36 = arith.addi %35, %34 : vector<8x1xi32>
    %37 = vector.broadcast %36 : vector<8x1xi32> to vector<8x8xi32>
    %38 = arith.cmpi eq, %33, %37 : vector<8x8xi32>
    %c8_i32_18 = arith.constant 8 : i32
    %39 = vector.broadcast %c8_i32_18 : i32 to vector<8x1xi32>
    %40 = arith.subi %36, %39 : vector<8x1xi32>
    %41 = vector.broadcast %40 : vector<8x1xi32> to vector<8x8xi32>
    %42 = arith.cmpi eq, %33, %41 : vector<8x8xi32>
    %c4_i32 = arith.constant 4 : i32
    %43 = vector.broadcast %c4_i32 : i32 to vector<8x8xi32>
    %44 = arith.cmpi sge, %33, %43 : vector<8x8xi32>
    %45 = arith.ori %38, %44 : vector<8x8xi1>
    %46 = arith.ori %42, %44 : vector<8x8xi1>
    %cst_19 = arith.constant -3.40282347E+38 : f32
    %47 = vector.broadcast %cst_19 : f32 to vector<8x8xf32>
    %48 = arith.select %45, %47, %29 : vector<8x8xi1>, vector<8x8xf32>
    %cst_20 = arith.constant -3.40282347E+38 : f32
    %49 = vector.broadcast %cst_20 : f32 to vector<8x8xf32>
    %50 = arith.select %46, %49, %32 : vector<8x8xi1>, vector<8x8xf32>
    %cst_21 = arith.constant dense<0xFF800000> : vector<8xf32>
    %51 = vector.multi_reduction <maximumf>, %48, %cst_21 [1] : vector<8x8xf32> to vector<8xf32>
    %52 = vector.shape_cast %51 : vector<8xf32> to vector<8x1xf32>
    %cst_22 = arith.constant dense<0xFF800000> : vector<8xf32>
    %53 = vector.multi_reduction <maximumf>, %50, %cst_22 [1] : vector<8x8xf32> to vector<8xf32>
    %54 = vector.shape_cast %53 : vector<8xf32> to vector<8x1xf32>
    %55 = arith.maximumf %52, %54 : vector<8x1xf32>
    %56 = vector.broadcast %55 : vector<8x1xf32> to vector<8x8xf32>
    %57 = arith.subf %48, %56 : vector<8x8xf32>
    %58 = math.exp %57 : vector<8x8xf32>
    %cst_23 = arith.constant dense<0.000000e+00> : vector<8xf32>
    %59 = vector.multi_reduction <add>, %58, %cst_23 [1] : vector<8x8xf32> to vector<8xf32>
    %60 = vector.shape_cast %59 : vector<8xf32> to vector<8x1xf32>
    %61 = vector.broadcast %55 : vector<8x1xf32> to vector<8x8xf32>
    %62 = arith.subf %50, %61 : vector<8x8xf32>
    %63 = math.exp %62 : vector<8x8xf32>
    %cst_24 = arith.constant dense<0.000000e+00> : vector<8xf32>
    %64 = vector.multi_reduction <add>, %63, %cst_24 [1] : vector<8x8xf32> to vector<8xf32>
    %65 = vector.shape_cast %64 : vector<8xf32> to vector<8x1xf32>
    %66 = arith.addf %60, %65 : vector<8x1xf32>
    %67 = math.log %66 : vector<8x1xf32>
    %68 = arith.addf %55, %67 : vector<8x1xf32>
    %69 = arith.subf %68, %17 : vector<8x1xf32>
    %70 = tpu.iota {dimensions = array<i32: 0>} : vector<8x1xi32>
    %71 = vector.broadcast %4 : i32 to vector<8x1xi32>
    %72 = arith.addi %71, %70 : vector<8x1xi32>
    %c4_i32_25 = arith.constant 4 : i32
    %73 = vector.broadcast %c4_i32_25 : i32 to vector<8x1xi32>
    %74 = arith.cmpi slt, %72, %73 : vector<8x1xi32>
    %cst_26 = arith.constant 0.000000e+00 : f32
    %75 = vector.broadcast %cst_26 : f32 to vector<8x1xf32>
    %76 = arith.select %74, %69, %75 : vector<8x1xi1>, vector<8x1xf32>
    %77 = vector.shape_cast %76 : vector<8x1xf32> to vector<1x8x1xf32>
    %cst_27 = arith.constant dense<0.000000e+00> : vector<1xf32>
    %78 = vector.multi_reduction <add>, %77, %cst_27 [1, 2] : vector<1x8x1xf32> to vector<1xf32>
    %79 = vector.shape_cast %78 : vector<1xf32> to vector<1x1x1xf32>
    %80 = vector.extract %79[0, 0, 0] : f32 from vector<1x1x1xf32>
    %81 = vector.broadcast %80 : f32 to vector<8x128xf32>
    %c0_28 = arith.constant 0 : index
    %c0_29 = arith.constant 0 : index
    %82 = vector.load %arg7[%c0_28, %c0_29] : memref<8x128xf32, #tpu.memory_space<vmem>>, vector<8x128xf32>
    tpu.vector_store %arg7[%c0_28, %c0_29], %81 {strides = array<i32>} : memref<8x128xf32, #tpu.memory_space<vmem>>, vector<8x128xf32>,
    return
  }
  func.func @transform_0(%arg0: i32) -> (i32, i32) {
    %c0_i32 = arith.constant 0 : i32
    %c0_i32_0 = arith.constant 0 : i32
    %c0_i32_1 = arith.constant 0 : i32
    return %c0_i32, %c0_i32_0 : i32, i32
  }
  func.func @transform_1(%arg0: i32) -> (i32, i32) {
    %c0_i32 = arith.constant 0 : i32
    %c0_i32_0 = arith.constant 0 : i32
    %c0_i32_1 = arith.constant 0 : i32
    return %c0_i32, %c0_i32_0 : i32, i32
  }
  func.func @transform_2(%arg0: i32) -> (i32, i32) {
    %c0_i32 = arith.constant 0 : i32
    %c0_i32_0 = arith.constant 0 : i32
    %c0_i32_1 = arith.constant 0 : i32
    return %c0_i32, %c0_i32_0 : i32, i32
  }
  func.func @transform_3(%arg0: i32) -> (i32, i32) {
    %c0_i32 = arith.constant 0 : i32
    %c0_i32_0 = arith.constant 0 : i32
    %c0_i32_1 = arith.constant 0 : i32
    return %c0_i32, %c0_i32_0 : i32, i32
  }
  func.func @transform_4(%arg0: i32) -> (i32, i32) {
    %c0_i32 = arith.constant 0 : i32
    %c0_i32_0 = arith.constant 0 : i32
    return %arg0, %c0_i32 : i32, i32
  }
  func.func @transform_5(%arg0: i32) -> (i32, i32) {
    %c1_i32 = arith.constant 1 : i32
    %0 = arith.cmpi slt, %arg0, %c1_i32 : i32
    %c1_i32_0 = arith.constant 1 : i32
    %1 = arith.addi %arg0, %c1_i32_0 : i32
    %c1_i32_1 = arith.constant 1 : i32
    %2 = arith.subi %arg0, %c1_i32_1 : i32
    %3 = arith.select %0, %1, %2 : i32
    %c0_i32 = arith.constant 0 : i32
    %c0_i32_2 = arith.constant 0 : i32
    return %3, %c0_i32 : i32, i32
  }
  func.func @transform_6(%arg0: i32) -> (i32, i32) {
    %c0_i32 = arith.constant 0 : i32
    %c0_i32_0 = arith.constant 0 : i32
    return %arg0, %c0_i32 : i32, i32
  }
}

</mosaic_0001>

<bundles_post_ra>
// kernel: tpu_custom_call.1
= control target key start
LH: loop header
LB: loop body
LE: loop exit
PB: predicated region body
PF: predicated region fallthrough
CT: control target
= control target key end

     0   :  { %11 = vsyncpa [#allocation3], 0  ;;  %s960_s0 = inlined_call_operand.vmem [shape: f32[8,32], index: 0, kind: input, shape index: {}]   ;;  %s961_s1 = inlined_call_operand.vmem [shape: f32[8,32], index: 1, kind: input, shape index: {}]   ;;  %s962_s2 = inlined_call_operand.vmem [shape: f32[1,8], index: 2, kind: input, shape index: {}]   ;;  %s963_s3 = inlined_call_operand.vmem [shape: f32[1,8], index: 3, kind: input, shape index: {}]   ;;  %s964_s4 = inlined_call_operand.vmem [shape: f32[16,1], index: 4, kind: input, shape index: {}]   ;;  %s965_s5 = inlined_call_operand.vmem [shape: f32[16,1], index: 5, kind: input, shape index: {}]   ;;  %s966_s6 = inlined_call_operand.hbm [shape: f32[16,128], index: 6, kind: output, shape index: {}]  }
   0x1   :  { %13 = vsyncpa [#allocation3 + $0x1], 0  ;;  %s820_s21 = smov 0   ;;  %s822_s22 = smov 0  }
   0x2   :  { %s824_s23 = smov 0   ;;  %s826_s24 = smov 0  }
   0x3 LB: > { %s841_s25 = sadd.s32 4294967295, %s779_s24   ;;  %s631_s26 = sadd.s32 4294967294, %s779_s24   ;;  %s779_s24 = sphi %s826_s24, %s972_s24   ;;  %s775_s23 = sphi %s824_s23, %s971_s23   ;;  %s771_s22 = sphi %s822_s22, %s970_s22   ;;  %s767_s21 = sphi %s820_s21, %s969_s21  }
   0x4   : > { %s845_s27 = sadd.s32 1, %s779_s24   ;;  %s170_s28 = sadd.s32 1, %s775_s23 }
   0x5   : > { %s167_s29 = ssub.s32 %s779_s24, %s845_s27  ;;  %p180_p0 = scmp.ne.s32.totalorder %s775_s23, %s771_s22 }
   0x6   : > { %p168_p1 = scmp.eq.s32.totalorder %s167_s29, 0  ;;  %p181_p2 = scmp.eq.s32.totalorder %s841_s25, 1 }
   0x7   : > { %p186_p3 = scmp.ne.s32.totalorder %s771_s22, %s767_s21  ;;  %p187_p4 = scmp.eq.s32.totalorder %s631_s26, 1 }
   0x8   : > { %s856_s30 = scalar_select %p168_p1, %s775_s23, %s170_s28  }
   0x9   : > { %p858_p5 = por %p181_p2, %p180_p0  ;;  %p862_p6 = por %p187_p4, %p186_p3 }
   0xa   : > { %p636_p7 = scmp.ge.s32.totalorder %s779_s24, 1  ;;  %p239_p8 = scmp.lt.s32.totalorder %s779_s24, 3 }
   0xc   : > { %p240_p9 = pnand %p636_p7, %p239_p8 }
   0xd   : > { %p276_p10 = scmp.lt.s32.totalorder (!%p240_p9), %s841_s25, 1  ;;  %s641_s18 = sshll.u32 (!%p240_p9), %s841_s25, 3 }
   0xe   : > { %243 = sbr.rel (%p240_p9) target bundleno = 888 (0x378), region = 44  ;;  %p293_p11 = scmp.ge.s32.totalorder (!%p240_p9), %s841_s25, 1 }
   0xf   : > { %s642_s19 = sadd.s32 (!%p240_p9), 4294967288, %s641_s18  ;;  %s281_s16 = sadd.s32 (!%p240_p9), 1, %s841_s25 }
  0x13   : > { %vm303_vm0 = vcmask 261120   ;;  %v321_v0 = vld [vmem:[%s960_s0] sm:$0xff]  ;;  %v781_v2 = vmov 0   ;;  %v782_v3 = vmov 0.0   ;;  %s277_s13 = scalar_select %p276_p10, %s841_s25, 1  ;;  %vm783_vm1 = vmmov 0  }
  0x14   : > { %v398_v1 = vld [vmem:[%s961_s1] sm:$0xff]  ;;  %712 = vset.pattern.permute.xlu0 %v781_v2  ;;  %658 = vmatprep.subr.mxu0 %v782_v3  ;;  %s974_s19 = smov (!%p293_p11, %s642_s19), %s641_s18  ;;  %v488_v12 = vlaneseq  ;;  %v492_v14 = vstv %s641_s18  ;;  %vm502_vm8 = vcmask 64512   ;;  %vm531_vm10 = vcmask 7168  }
  0x15   : > { %663 = vmatprep.subr.mxu1 %v782_v3  ;;  %659 = vmatpush3.xpose.msk.msra.mxu0 %vm303_vm0, %v321_v0  ;;  %s638_s14 = sshll.u32 %s277_s13, 3  ;;  %s296_s29 = scalar_lea.vmem %s960_s0, %s974_s19  ;;  %v647_v18 = vld [vmem:[%s962_s2] ss:$0 sm:$0xff]  ;;  %v527_v50 = vstv %s974_s19 }
  0x16   : > { %664 = vmatpush3.xpose.msk.msra.mxu1 %vm303_vm0, %v398_v1  ;;  %s279_s17 = scalar_lea.vmem %s964_s4, %s638_s14  ;;  %660 = vmatprep.mubr.msk.f32.mxu0 %vm783_vm1, %v782_v3  ;;  %s298_s11 = scalar_lea.vmem %s961_s1, %s974_s19  ;;  %v297_v7 = vld [vmem:[%s296_s29] sm:$0xff]  ;;  %v491_v13 = vshrl.u32 %v488_v12, 7  ;;  %v489_v16 = vand.u32 127, %v488_v12 }
  0x17   : > { %v883_v4 = vld [vmem:[%s279_s17] sm:$0xff]  ;;  %665 = vmatprep.mubr.msk.f32.mxu1 %vm783_vm1, %v782_v3  ;;  %s310_s20 = scalar_select %p293_p11, 1, 0 }
  0x18   : > { %v314_v5 = vmul.f32 10.0, %v883_v4  ;;  %v299_v8 = vld [vmem:[%s298_s11] sm:$0xff]  ;;  %v493_v15 = vadd.s32 %v492_v14, %v491_v13  ;;  %vm497_vm4 = vcmp.ge.s32.totalorder %v489_v16, 4  ;;  %s639_s17 = sadd.s32 4294967295, %s841_s25  ;;  %v528_v52 = vadd.s32 %v527_v50, %v491_v13  ;;  %s273_s19 = sand.u32 1, %s771_s22  }
  0x19   : > { %v311_v6 = vstv %s310_s20  ;;  %v648_v19 = vld [vmem:[%s963_s3] ss:$0 sm:$0xff]  ;;  %v302_v40 = vmul.f32 %v299_v8, %v297_v7  ;;  %s976_s16 = smov (!%p276_p10, %s281_s16), %s639_s17  ;;  %s637_s29 = sshll.u32 %s273_s19, 3 }
  0x1a   : > { %317 = vperm.xlu0 %712, %v314_v5   ;;  %vm312_vm2 = vcmp.eq.s32.totalorder %v311_v6, 1  ;;  %v649_v17 = vadd.s32 4294967288, %v493_v15  ;;  %vm494_vm5 = vcmp.eq.s32.totalorder %v489_v16, %v493_v15  ;;  %p284_p12 = scmp.lt.s32.totalorder %s976_s16, 1  ;;  %vm529_vm9 = vcmp.lt.s32.totalorder %v528_v52, 4  ;;  %s275_s9 = scalar_lea.vmem [#allocation2], %s637_s29 }
  0x1b   : > { %v313_v9 = vsel %vm312_vm2, %v299_v8, %v297_v7  ;;  %vm498_vm7 = vmor %vm494_vm5, %vm497_vm4  ;;  %v304_v42 = vsel %vm303_vm0, %v302_v40, 0.0  ;;  %s558_s10 = sshll.u32 %s275_s9, 4  ;;  %s651_s11 = sshll.u32 %s841_s25, 7  ;;  %s922_s10 = int_to_ptr.vmem [resolvable:$true] %s558_s10 }
  0x1c   : > { %vm496_vm3 = vcmp.eq.s32.totalorder %v489_v16, %v649_v17  ;;  %s978_s16 = smov (!%p284_p12, %s976_s16), 1  ;;  %s556_s15 = scalar_lea.hbm %s966_s6, %s651_s11 }
  0x1d   : > { %vm499_vm6 = vmor %vm496_vm3, %vm497_vm4  ;;  %s640_s18 = sshll.u32 %s978_s16, 3  ;;  %s545_s16 = scalar_lea.sflag [#allocation3], %s273_s19 }
  0x1e   : > { %s287_s28 = scalar_lea.vmem %s965_s5, %s640_s18  ;;  %s719_s17 = scalar_lea.vmem %s922_s10, 128 }
  0x1f   : > { %v301_v46 = vld [vmem:[%s287_s28] sm:$0xff]  ;;  %p720_p13 = scmp.ne.s32.totalorder %s922_s10, %s719_s17  ;;  %s784_s18 = smov [#allocation2]  }
  0x20   : > { %v307_v47 = vmul.f32 %v301_v46, %v883_v4  ;;  %s723_s25 = sshll.u32 %s784_s18, 4  ;;  %s724_s25 = int_to_ptr.vmem [resolvable:$false] %s723_s25 }
  0x21   : > { %p721_p0 = pnand %p720_p13, %p858_p5  ;;  %s725_s20 = scalar_lea.vmem %s724_s25, 256 }
  0x22   : > { %p726_p2 = scmp.lt.s32.totalorder %s922_s10, %s724_s25  ;;  %p727_p3 = scmp.lt.s32.totalorder %s725_s20, %s719_s17 }
  0x23   : > { %p722_p1 = pneg %p721_p0 }
  0x24   : > { %p728_p4 = por %p727_p3, %p726_p2 }
  0x26   : > { %p729_p7 = pnand %p728_p4, %p722_p1 }
  0x95   : > { %v318_v10 = vpop.permute.xlu0 %317 }
  0x96   : > { %v320_v11 = vmul.f32 %v318_v10, %v313_v9 }
  0x98   : > { %661 = vmatmul.mubr.msk.f32.vlgmr.msra.gmra.mxu0 %vm303_vm0, %v320_v11  ;;  %666 = vmatmul.mubr.msk.f32.vlgmr.msra.gmra.mxu1 %vm303_vm0, %v320_v11 }
 0x158   : > { %v394_v20 = vpop.f32.mrf.mxu0  ;;  %v468_v21 = vpop.f32.mrf.mxu1 }
 0x159   : > { %v479_v22 = vmul.f32 %v647_v18, %v394_v20  ;;  %v487_v23 = vmul.f32 %v648_v19, %v468_v21 }
 0x15a   : > { %v662_v24 = vpop.f32.mrf.mxu0  ;;  %v667_v25 = vpop.f32.mrf.mxu1 }
 0x15b   : > { %v501_v26 = vsel %vm499_vm6, -3.4028235e+38, %v487_v23  ;;  %v500_v27 = vsel %vm498_vm7, -3.4028235e+38, %v479_v22 }
 0x15c   : > { %v506_v28 = vsel %vm502_vm8, %v501_v26, -inf  ;;  %v503_v29 = vsel %vm502_vm8, %v500_v27, -inf }
 0x15d   : > { %507 = vmax.xlane.f32.xlu1 %v506_v28  ;;  %504 = vmax.xlane.f32.xlu0 %v503_v29 }
 0x1e6   : > { %v508_v30 = vpop.xlane.xlu1 %507  ;;  %v505_v31 = vpop.xlane.xlu0 %504 }
 0x1e7   : > { %v509_v32 = vmax.f32 %v505_v31, %v508_v30 }
 0x1e9   : > { %v510_v33 = vsub.f32 %v500_v27, %v509_v32  ;;  %v516_v34 = vsub.f32 %v501_v26, %v509_v32 }
 0x1eb   : > { %v511_v35 = vmul.f32 1.442695, %v510_v33  ;;  %v517_v36 = vmul.f32 1.442695, %v516_v34 }
 0x1ed   : > { %713 = vpow2.f32 %v511_v35 }
 0x1ee   : > { %715 = vpow2.f32 %v517_v36 }
 0x1fa   : > { %v714_v37 = vpop.eup %713 }
 0x1fb   : > { %v513_v38 = vsel %vm502_vm8, %v714_v37, 0.0  ;;  %v716_v39 = vpop.eup %715 }
 0x1fc   : > { %514 = vadd.xlane.f32.xlu1 %v513_v38  ;;  %v519_v41 = vsel %vm502_vm8, %v716_v39, 0.0 }
 0x200   : > { %520 = vadd.xlane.f32.xlu1 %v519_v41 }
 0x204   : > { %305 = vadd.xlane.f32.xlu1 %v304_v42 }
 0x285   : > { %v515_v43 = vpop.xlane.xlu1 %514 }
 0x289   : > { %v521_v44 = vpop.xlane.xlu1 %520 }
 0x28a   : > { %v522_v45 = vadd.f32 %v521_v44, %v515_v43 }
 0x28c   : > { %717 = vlog2.f32 %v522_v45 }
 0x28d   : > { %v306_v48 = vpop.xlane.xlu1 %305 }
 0x28e   : > { %v308_v49 = vmul.f32 %v307_v47, %v306_v48 }
 0x290   : > { %v309_v54 = vmul.f32 10.0, %v308_v49 }
 0x299   : > { %v718_v51 = vpop.eup %717 }
 0x29a   : > { %v524_v53 = vmul.f32 0.6931472, %v718_v51 }
 0x29c   : > { %v525_v55 = vadd.f32 %v524_v53, %v509_v32 }
 0x29e   : > { %v526_v56 = vsub.f32 %v525_v55, %v309_v54 }
 0x2a0   : > { %v530_v57 = vsel %vm529_vm9, %v526_v56, 0.0 }
 0x2a1   : > { %v532_v58 = vsel %vm531_vm10, %v530_v57, 0.0 }
 0x2a2   : > { %533 = vadd.xlane.f32.xlu1 %v532_v58 }
 0x32b   : > { %v534_v59 = vpop.xlane.xlu1 %533 }
 0x32c   : > { %v535_v60 = vrot.slane %v534_v59, 4 }
 0x32e   : > { %v536_v61 = vadd.f32 %v535_v60, %v534_v59 }
 0x330   : > { %v537_v62 = vrot.slane %v536_v61, 2 }
 0x332   : > { %v538_v63 = vadd.f32 %v537_v62, %v536_v61 }
 0x334   : > { %v539_v0 = vrot.slane %v538_v63, 1 }
 0x336   : > { %v540_v1 = vadd.f32 %v539_v0, %v538_v63 }
 0x338   : > { %668 = vpush %v540_v1 }
 0x369   : > { %s669_s12 = spop %668 }
 0x36a   : > { %v542_v2 = vstv %s669_s12 }
 0x36b   : > { %543 = vst [vmem:[%s275_s9] sm:$0xff] %v542_v2 }
 0x36c   : > { %732 = shalt.err (!%p729_p7)
}
 0x36d   : > { %s733_s26 = scalar_lea.hbm %s556_s15, 128  ;;  %s737_s29 = scalar_lea.hbm %s966_s6, 256 }
 0x36e   : > { %p734_p8 = scmp.ne.s32.totalorder %s556_s15, %s733_s26  ;;  %p738_p11 = scmp.lt.s32.totalorder %s556_s15, %s966_s6 }
 0x36f   : > { %p739_p12 = scmp.lt.s32.totalorder %s737_s29, %s733_s26 }
 0x370   : > { %p735_p9 = pnand %p734_p8, %p858_p5 }
 0x371   : > { %p740_p13 = por %p739_p12, %p738_p11 }
 0x372   : > { %p736_p10 = pneg %p735_p9 }
 0x374   : > { %p741_p0 = pnand %p740_p13, %p736_p10 }
 0x376   : > { %744 = shalt.err (!%p741_p0)
}
 0x377   : > { %670 = dma.vmem_to_hbm [thread:$0]  (%p858_p5), %s922_s10, 128, %s556_s15, %s545_s16  }
 0x378 PF: > { %p676_p1 = scmp.ge.s32.totalorder %s779_s24, 2  ;;  %s570_s12 = sand.u32 1, %s767_s21  }
 0x379   : > { %s571_s13 = scalar_lea.sflag [#allocation3], %s570_s12 }
 0x37a   : > { %p673_p2 = pnand %p676_p1, %p862_p6 }
 0x37c   : > { %p674_p3 = pneg %p673_p2 }
 0x37e   : > { %762 = dma.done.wait (%p674_p3), %s571_s13, 128  }
 0x37f   : > { %764 = vsyncadd (%p674_p3), %s571_s13, 4294967168  ;;  %p16_p4 = scmp.ge.s32.totalorder %s845_s27, 4   ;;  %s969_s21 = smov %s771_s22 }
 0x380   : > { %s970_s22 = smov %s775_s23  ;;  %s971_s23 = smov %s856_s30 }
 0x381   : > { %s972_s24 = smov %s845_s27  ;;  %18 = sbr.rel (!%p16_p4) target bundleno = 3 (0x3), region = 84 }
 0x386   :  { %576 = vsyncpa [#allocation3], 1 }
 0x387   :  { %578 = vsyncpa [#allocation3 + $0x1], 1 }

// kernel: tpu_custom_call.1
= control target key start
LH: loop header
LB: loop body
LE: loop exit
PB: predicated region body
PF: predicated region fallthrough
CT: control target
= control target key end

     0   :  { %11 = vsyncpa [#allocation3], 0  ;;  %s960_s0 = inlined_call_operand.vmem [shape: f32[8,32], index: 0, kind: input, shape index: {}]   ;;  %s961_s1 = inlined_call_operand.vmem [shape: f32[8,32], index: 1, kind: input, shape index: {}]   ;;  %s962_s2 = inlined_call_operand.vmem [shape: f32[1,8], index: 2, kind: input, shape index: {}]   ;;  %s963_s3 = inlined_call_operand.vmem [shape: f32[1,8], index: 3, kind: input, shape index: {}]   ;;  %s964_s4 = inlined_call_operand.vmem [shape: f32[16,1], index: 4, kind: input, shape index: {}]   ;;  %s965_s5 = inlined_call_operand.vmem [shape: f32[16,1], index: 5, kind: input, shape index: {}]   ;;  %s966_s6 = inlined_call_operand.hbm [shape: f32[16,128], index: 6, kind: output, shape index: {}]  }
   0x1   :  { %13 = vsyncpa [#allocation3 + $0x1], 0  ;;  %s820_s21 = smov 0   ;;  %s822_s22 = smov 0  }
   0x2   :  { %s824_s23 = smov 0   ;;  %s826_s24 = smov 0  }
   0x3 LB: > { %s841_s25 = sadd.s32 4294967295, %s779_s24   ;;  %s631_s26 = sadd.s32 4294967294, %s779_s24   ;;  %s779_s24 = sphi %s826_s24, %s972_s24   ;;  %s775_s23 = sphi %s824_s23, %s971_s23   ;;  %s771_s22 = sphi %s822_s22, %s970_s22   ;;  %s767_s21 = sphi %s820_s21, %s969_s21  }
   0x4   : > { %s845_s27 = sadd.s32 1, %s779_s24   ;;  %s170_s28 = sadd.s32 1, %s775_s23 }
   0x5   : > { %s167_s29 = ssub.s32 %s779_s24, %s845_s27  ;;  %p180_p0 = scmp.ne.s32.totalorder %s775_s23, %s771_s22 }
   0x6   : > { %p168_p1 = scmp.eq.s32.totalorder %s167_s29, 0  ;;  %p181_p2 = scmp.eq.s32.totalorder %s841_s25, 1 }
   0x7   : > { %p186_p3 = scmp.ne.s32.totalorder %s771_s22, %s767_s21  ;;  %p187_p4 = scmp.eq.s32.totalorder %s631_s26, 1 }
   0x8   : > { %s856_s30 = scalar_select %p168_p1, %s775_s23, %s170_s28  }
   0x9   : > { %p858_p5 = por %p181_p2, %p180_p0  ;;  %p862_p6 = por %p187_p4, %p186_p3 }
   0xa   : > { %p636_p7 = scmp.ge.s32.totalorder %s779_s24, 1  ;;  %p239_p8 = scmp.lt.s32.totalorder %s779_s24, 3 }
   0xc   : > { %p240_p9 = pnand %p636_p7, %p239_p8 }
   0xd   : > { %p276_p10 = scmp.lt.s32.totalorder (!%p240_p9), %s841_s25, 1  ;;  %s641_s18 = sshll.u32 (!%p240_p9), %s841_s25, 3 }
   0xe   : > { %243 = sbr.rel (%p240_p9) target bundleno = 888 (0x378), region = 44  ;;  %p293_p11 = scmp.ge.s32.totalorder (!%p240_p9), %s841_s25, 1 }
   0xf   : > { %s642_s19 = sadd.s32 (!%p240_p9), 4294967288, %s641_s18  ;;  %s281_s16 = sadd.s32 (!%p240_p9), 1, %s841_s25 }
  0x13   : > { %vm303_vm0 = vcmask 261120   ;;  %v321_v0 = vld [vmem:[%s960_s0] sm:$0xff]  ;;  %v781_v2 = vmov 0   ;;  %v782_v3 = vmov 0.0   ;;  %s277_s13 = scalar_select %p276_p10, %s841_s25, 1  ;;  %vm783_vm1 = vmmov 0  }
  0x14   : > { %v398_v1 = vld [vmem:[%s961_s1] sm:$0xff]  ;;  %712 = vset.pattern.permute.xlu0 %v781_v2  ;;  %658 = vmatprep.subr.mxu0 %v782_v3  ;;  %s974_s19 = smov (!%p293_p11, %s642_s19), %s641_s18  ;;  %v488_v12 = vlaneseq  ;;  %v492_v14 = vstv %s641_s18  ;;  %vm502_vm8 = vcmask 64512   ;;  %vm531_vm10 = vcmask 7168  }
  0x15   : > { %663 = vmatprep.subr.mxu1 %v782_v3  ;;  %659 = vmatpush3.xpose.msk.msra.mxu0 %vm303_vm0, %v321_v0  ;;  %s638_s14 = sshll.u32 %s277_s13, 3  ;;  %s296_s29 = scalar_lea.vmem %s960_s0, %s974_s19  ;;  %v647_v18 = vld [vmem:[%s962_s2] ss:$0 sm:$0xff]  ;;  %v527_v50 = vstv %s974_s19 }
  0x16   : > { %664 = vmatpush3.xpose.msk.msra.mxu1 %vm303_vm0, %v398_v1  ;;  %s279_s17 = scalar_lea.vmem %s964_s4, %s638_s14  ;;  %660 = vmatprep.mubr.msk.f32.mxu0 %vm783_vm1, %v782_v3  ;;  %s298_s11 = scalar_lea.vmem %s961_s1, %s974_s19  ;;  %v297_v7 = vld [vmem:[%s296_s29] sm:$0xff]  ;;  %v491_v13 = vshrl.u32 %v488_v12, 7  ;;  %v489_v16 = vand.u32 127, %v488_v12 }
  0x17   : > { %v883_v4 = vld [vmem:[%s279_s17] sm:$0xff]  ;;  %665 = vmatprep.mubr.msk.f32.mxu1 %vm783_vm1, %v782_v3  ;;  %s310_s20 = scalar_select %p293_p11, 1, 0 }
  0x18   : > { %v314_v5 = vmul.f32 10.0, %v883_v4  ;;  %v299_v8 = vld [vmem:[%s298_s11] sm:$0xff]  ;;  %v493_v15 = vadd.s32 %v492_v14, %v491_v13  ;;  %vm497_vm4 = vcmp.ge.s32.totalorder %v489_v16, 4  ;;  %s639_s17 = sadd.s32 4294967295, %s841_s25  ;;  %v528_v52 = vadd.s32 %v527_v50, %v491_v13  ;;  %s273_s19 = sand.u32 1, %s771_s22  }
  0x19   : > { %v311_v6 = vstv %s310_s20  ;;  %v648_v19 = vld [vmem:[%s963_s3] ss:$0 sm:$0xff]  ;;  %v302_v40 = vmul.f32 %v299_v8, %v297_v7  ;;  %s976_s16 = smov (!%p276_p10, %s281_s16), %s639_s17  ;;  %s637_s29 = sshll.u32 %s273_s19, 3 }
  0x1a   : > { %317 = vperm.xlu0 %712, %v314_v5   ;;  %vm312_vm2 = vcmp.eq.s32.totalorder %v311_v6, 1  ;;  %v649_v17 = vadd.s32 4294967288, %v493_v15  ;;  %vm494_vm5 = vcmp.eq.s32.totalorder %v489_v16, %v493_v15  ;;  %p284_p12 = scmp.lt.s32.totalorder %s976_s16, 1  ;;  %vm529_vm9 = vcmp.lt.s32.totalorder %v528_v52, 4  ;;  %s275_s9 = scalar_lea.vmem [#allocation2], %s637_s29 }
  0x1b   : > { %v313_v9 = vsel %vm312_vm2, %v299_v8, %v297_v7  ;;  %vm498_vm7 = vmor %vm494_vm5, %vm497_vm4  ;;  %v304_v42 = vsel %vm303_vm0, %v302_v40, 0.0  ;;  %s558_s10 = sshll.u32 %s275_s9, 4  ;;  %s651_s11 = sshll.u32 %s841_s25, 7  ;;  %s922_s10 = int_to_ptr.vmem [resolvable:$true] %s558_s10 }
  0x1c   : > { %vm496_vm3 = vcmp.eq.s32.totalorder %v489_v16, %v649_v17  ;;  %s978_s16 = smov (!%p284_p12, %s976_s16), 1  ;;  %s556_s15 = scalar_lea.hbm %s966_s6, %s651_s11 }
  0x1d   : > { %vm499_vm6 = vmor %vm496_vm3, %vm497_vm4  ;;  %s640_s18 = sshll.u32 %s978_s16, 3  ;;  %s545_s16 = scalar_lea.sflag [#allocation3], %s273_s19 }
  0x1e   : > { %s287_s28 = scalar_lea.vmem %s965_s5, %s640_s18  ;;  %s719_s17 = scalar_lea.vmem %s922_s10, 128 }
  0x1f   : > { %v301_v46 = vld [vmem:[%s287_s28] sm:$0xff]  ;;  %p720_p13 = scmp.ne.s32.totalorder %s922_s10, %s719_s17  ;;  %s784_s18 = smov [#allocation2]  }
  0x20   : > { %v307_v47 = vmul.f32 %v301_v46, %v883_v4  ;;  %s723_s25 = sshll.u32 %s784_s18, 4  ;;  %s724_s25 = int_to_ptr.vmem [resolvable:$false] %s723_s25 }
  0x21   : > { %p721_p0 = pnand %p720_p13, %p858_p5  ;;  %s725_s20 = scalar_lea.vmem %s724_s25, 256 }
  0x22   : > { %p726_p2 = scmp.lt.s32.totalorder %s922_s10, %s724_s25  ;;  %p727_p3 = scmp.lt.s32.totalorder %s725_s20, %s719_s17 }
  0x23   : > { %p722_p1 = pneg %p721_p0 }
  0x24   : > { %p728_p4 = por %p727_p3, %p726_p2 }
  0x26   : > { %p729_p7 = pnand %p728_p4, %p722_p1 }
  0x95   : > { %v318_v10 = vpop.permute.xlu0 %317 }
  0x96   : > { %v320_v11 = vmul.f32 %v318_v10, %v313_v9 }
  0x98   : > { %661 = vmatmul.mubr.msk.f32.vlgmr.msra.gmra.mxu0 %vm303_vm0, %v320_v11  ;;  %666 = vmatmul.mubr.msk.f32.vlgmr.msra.gmra.mxu1 %vm303_vm0, %v320_v11 }
 0x158   : > { %v394_v20 = vpop.f32.mrf.mxu0  ;;  %v468_v21 = vpop.f32.mrf.mxu1 }
 0x159   : > { %v479_v22 = vmul.f32 %v647_v18, %v394_v20  ;;  %v487_v23 = vmul.f32 %v648_v19, %v468_v21 }
 0x15a   : > { %v662_v24 = vpop.f32.mrf.mxu0  ;;  %v667_v25 = vpop.f32.mrf.mxu1 }
 0x15b   : > { %v501_v26 = vsel %vm499_vm6, -3.4028235e+38, %v487_v23  ;;  %v500_v27 = vsel %vm498_vm7, -3.4028235e+38, %v479_v22 }
 0x15c   : > { %v506_v28 = vsel %vm502_vm8, %v501_v26, -inf  ;;  %v503_v29 = vsel %vm502_vm8, %v500_v27, -inf }
 0x15d   : > { %507 = vmax.xlane.f32.xlu1 %v506_v28  ;;  %504 = vmax.xlane.f32.xlu0 %v503_v29 }
 0x1e6   : > { %v508_v30 = vpop.xlane.xlu1 %507  ;;  %v505_v31 = vpop.xlane.xlu0 %504 }
 0x1e7   : > { %v509_v32 = vmax.f32 %v505_v31, %v508_v30 }
 0x1e9   : > { %v510_v33 = vsub.f32 %v500_v27, %v509_v32  ;;  %v516_v34 = vsub.f32 %v501_v26, %v509_v32 }
 0x1eb   : > { %v511_v35 = vmul.f32 1.442695, %v510_v33  ;;  %v517_v36 = vmul.f32 1.442695, %v516_v34 }
 0x1ed   : > { %713 = vpow2.f32 %v511_v35 }
 0x1ee   : > { %715 = vpow2.f32 %v517_v36 }
 0x1fa   : > { %v714_v37 = vpop.eup %713 }
 0x1fb   : > { %v513_v38 = vsel %vm502_vm8, %v714_v37, 0.0  ;;  %v716_v39 = vpop.eup %715 }
 0x1fc   : > { %514 = vadd.xlane.f32.xlu1 %v513_v38  ;;  %v519_v41 = vsel %vm502_vm8, %v716_v39, 0.0 }
 0x200   : > { %520 = vadd.xlane.f32.xlu1 %v519_v41 }
 0x204   : > { %305 = vadd.xlane.f32.xlu1 %v304_v42 }
 0x285   : > { %v515_v43 = vpop.xlane.xlu1 %514 }
 0x289   : > { %v521_v44 = vpop.xlane.xlu1 %520 }
 0x28a   : > { %v522_v45 = vadd.f32 %v521_v44, %v515_v43 }
 0x28c   : > { %717 = vlog2.f32 %v522_v45 }
 0x28d   : > { %v306_v48 = vpop.xlane.xlu1 %305 }
 0x28e   : > { %v308_v49 = vmul.f32 %v307_v47, %v306_v48 }
 0x290   : > { %v309_v54 = vmul.f32 10.0, %v308_v49 }
 0x299   : > { %v718_v51 = vpop.eup %717 }
 0x29a   : > { %v524_v53 = vmul.f32 0.6931472, %v718_v51 }
 0x29c   : > { %v525_v55 = vadd.f32 %v524_v53, %v509_v32 }
 0x29e   : > { %v526_v56 = vsub.f32 %v525_v55, %v309_v54 }
 0x2a0   : > { %v530_v57 = vsel %vm529_vm9, %v526_v56, 0.0 }
 0x2a1   : > { %v532_v58 = vsel %vm531_vm10, %v530_v57, 0.0 }
 0x2a2   : > { %533 = vadd.xlane.f32.xlu1 %v532_v58 }
 0x32b   : > { %v534_v59 = vpop.xlane.xlu1 %533 }
 0x32c   : > { %v535_v60 = vrot.slane %v534_v59, 4 }
 0x32e   : > { %v536_v61 = vadd.f32 %v535_v60, %v534_v59 }
 0x330   : > { %v537_v62 = vrot.slane %v536_v61, 2 }
 0x332   : > { %v538_v63 = vadd.f32 %v537_v62, %v536_v61 }
 0x334   : > { %v539_v0 = vrot.slane %v538_v63, 1 }
 0x336   : > { %v540_v1 = vadd.f32 %v539_v0, %v538_v63 }
 0x338   : > { %668 = vpush %v540_v1 }
 0x369   : > { %s669_s12 = spop %668 }
 0x36a   : > { %v542_v2 = vstv %s669_s12 }
 0x36b   : > { %543 = vst [vmem:[%s275_s9] sm:$0xff] %v542_v2 }
 0x36c   : > { %732 = shalt.err (!%p729_p7)
}
 0x36d   : > { %s733_s26 = scalar_lea.hbm %s556_s15, 128  ;;  %s737_s29 = scalar_lea.hbm %s966_s6, 256 }
 0x36e   : > { %p734_p8 = scmp.ne.s32.totalorder %s556_s15, %s733_s26  ;;  %p738_p11 = scmp.lt.s32.totalorder %s556_s15, %s966_s6 }
 0x36f   : > { %p739_p12 = scmp.lt.s32.totalorder %s737_s29, %s733_s26 }
 0x370   : > { %p735_p9 = pnand %p734_p8, %p858_p5 }
 0x371   : > { %p740_p13 = por %p739_p12, %p738_p11 }
 0x372   : > { %p736_p10 = pneg %p735_p9 }
 0x374   : > { %p741_p0 = pnand %p740_p13, %p736_p10 }
 0x376   : > { %744 = shalt.err (!%p741_p0)
}
 0x377   : > { %670 = dma.vmem_to_hbm [thread:$0]  (%p858_p5), %s922_s10, 128, %s556_s15, %s545_s16  }
 0x378 PF: > { %p676_p1 = scmp.ge.s32.totalorder %s779_s24, 2  ;;  %s570_s12 = sand.u32 1, %s767_s21  }
 0x379   : > { %s571_s13 = scalar_lea.sflag [#allocation3], %s570_s12 }
 0x37a   : > { %p673_p2 = pnand %p676_p1, %p862_p6 }
 0x37c   : > { %p674_p3 = pneg %p673_p2 }
 0x37e   : > { %762 = dma.done.wait (%p674_p3), %s571_s13, 128  }
 0x37f   : > { %764 = vsyncadd (%p674_p3), %s571_s13, 4294967168  ;;  %p16_p4 = scmp.ge.s32.totalorder %s845_s27, 4   ;;  %s969_s21 = smov %s771_s22 }
 0x380   : > { %s970_s22 = smov %s775_s23  ;;  %s971_s23 = smov %s856_s30 }
 0x381   : > { %s972_s24 = smov %s845_s27  ;;  %18 = sbr.rel (!%p16_p4) target bundleno = 3 (0x3), region = 84 }
 0x386   :  { %576 = vsyncpa [#allocation3], 1 }
 0x387   :  { %578 = vsyncpa [#allocation3 + $0x1], 1 }

</bundles_post_ra>
